<compile_context>
chip_gen: v7x
topology: tpu7x:2x2x1
jax: 0.10.0
libtpu: 0.0.40
codegen_flags: <defaults>
</compile_context>

<pallas_src>
import jax
import jax.numpy as jnp
from jax import lax
from jax.experimental import pallas as pl
from jax.experimental.pallas import tpu as pltpu

_SIGMA_EPS = 1e-12


def critic_kernel(x_ref, w1_ref, b1_ref, w3_ref, b3_ref, fD_ref, p_ref):
    """Fused (Linear -> ReLU) hidden layer + spectral-normed linear head.

    x_ref : [TILE_B, n_input]   w1_ref: [n_input, n_hidden]
    b1_ref: [1, n_hidden]       w3_ref: [1, n_hidden] (raw fc3 weight row)
    b3_ref: [1, 1] (SMEM)       fD_ref: [TILE_B, n_hidden]   p_ref: [TILE_B, 1]
    """
    # Hidden layer: Linear + ReLU (dropout == identity in eval mode). MXU.
    h = jnp.dot(x_ref[...], w1_ref[...], preferred_element_type=jnp.float32)
    h = jnp.maximum(h + b1_ref[...], 0.0)
    fD_ref[...] = h.astype(fD_ref.dtype)

    # Spectral-normalized head. sigma of the (1, n_hidden) weight is its L2
    # norm; compute inv_sigma on the EUP (rsqrt) with an eps guard.
    w3 = w3_ref[...]                                    # (1, n_hidden)
    inv_sigma = lax.rsqrt(jnp.sum(w3 * w3) + _SIGMA_EPS)
    # N=1 "matmul" as a VPU multiply + XLU row reduction (MXU stays free).
    p = jnp.sum(h * w3, axis=-1, keepdims=True) * inv_sigma + b3_ref[0, 0]
    p_ref[...] = p.astype(p_ref.dtype)


def _round_up(a, m):
    return (a + m - 1) // m * m


def critic_forward(x, w1, b1, w3, b3, *, tile_b=1024):
    """Batch-tiled fused Critic forward. Returns (f_D, p_real)."""
    B, n_in = x.shape
    n_hidden = w1.shape[1]

    # Tile the batch axis; weights stay resident across the grid.
    tile_b = max(8, min(tile_b, _round_up(B, 8)))
    B_pad = _round_up(B, tile_b)
    if B_pad != B:
        x = jnp.pad(x, ((0, B_pad - B), (0, 0)))
    num_tiles = B_pad // tile_b

    b1_row = b1.reshape(1, n_hidden).astype(jnp.float32)
    w3_row = w3.reshape(1, n_hidden).astype(jnp.float32)
    b3_s = b3.reshape(1, 1).astype(jnp.float32)

    fD, p_real = pl.pallas_call(
        critic_kernel,
        out_shape=(
            jax.ShapeDtypeStruct((B_pad, n_hidden), jnp.float32),
            jax.ShapeDtypeStruct((B_pad, 1), jnp.float32),
        ),
        grid=(num_tiles,),
        in_specs=[
            pl.BlockSpec((tile_b, n_in), lambda i: (i, 0)),        # x (streamed)
            pl.BlockSpec((n_in, n_hidden), lambda i: (0, 0)),      # w1 (resident)
            pl.BlockSpec((1, n_hidden), lambda i: (0, 0)),         # b1 (resident)
            pl.BlockSpec((1, n_hidden), lambda i: (0, 0)),         # w3 row (raw)
            pl.BlockSpec((1, 1), lambda i: (0, 0),
                         memory_space=pltpu.MemorySpace.SMEM),     # b3 scalar
        ],
        out_specs=(
            pl.BlockSpec((tile_b, n_hidden), lambda i: (i, 0)),    # f_D
            pl.BlockSpec((tile_b, 1), lambda i: (i, 0)),           # p_real
        ),
        compiler_params=pltpu.CompilerParams(
            dimension_semantics=("parallel",),   # v7x: shard batch over 2 TCs
            vmem_limit_bytes=32 << 20,           # sized for v7x (64 MiB phys)
        ),
    )(x, w1, b1_row, w3_row, b3_s)

    if B_pad != B:
        fD = fD[:B]
        p_real = p_real[:B]
    return fD, p_real


def critic_reference(x, w1, b1, w3, b3):
    """Pure-JAX reference for correctness checking."""
    inv_sigma = 1.0 / jnp.sqrt(jnp.sum(w3 * w3) + _SIGMA_EPS)
    h = jnp.maximum(x @ w1 + b1[None, :], 0.0)
    p = h @ (w3 * inv_sigma).reshape(-1, 1) + b3.reshape(1, 1)
    return h, p


if __name__ == "__main__":
    # Shapes consistent with Critic(n_input=32, n_hidden=128, n_layers=1).
    # B=200 with tile_b=128 exercises the batch grid (2 tiles) and padding.
    B, n_input, n_hidden = 200, 32, 128

    key = jax.random.PRNGKey(0)
    k_x, k_w1, k_b1, k_w3, k_b3 = jax.random.split(key, 5)

    x = jax.random.normal(k_x, (B, n_input), dtype=jnp.float32)

    # Deterministic synthetic parameters (kaiming-uniform-ish scaling).
    w1 = jax.random.uniform(k_w1, (n_input, n_hidden), jnp.float32,
                            -1.0, 1.0) / jnp.sqrt(n_input)
    b1 = jax.random.uniform(k_b1, (n_hidden,), jnp.float32,
                            -1.0, 1.0) / jnp.sqrt(n_input)
    w3 = jax.random.uniform(k_w3, (n_hidden,), jnp.float32,
                            -1.0, 1.0) / jnp.sqrt(n_hidden)
    b3 = jax.random.uniform(k_b3, (1,), jnp.float32,
                            -1.0, 1.0) / jnp.sqrt(n_hidden)

    fwd = jax.jit(lambda *a: critic_forward(*a, tile_b=128))
    fD, p_real = fwd(x, w1, b1, w3, b3)
    jax.block_until_ready((fD, p_real))

    fD_ref, p_ref = critic_reference(x, w1, b1, w3, b3)
    assert fD.shape == (B, n_hidden) and p_real.shape == (B, 1)
    assert jnp.allclose(fD, fD_ref, atol=1e-5, rtol=1e-5)
    assert jnp.allclose(p_real, p_ref, atol=1e-5, rtol=1e-5)

    print("KERNEL_OK")
</pallas_src>

<mosaic_0001>
module attributes {stable_mosaic.version = 11 : i64} {
  func.func @critic_kernel(%arg0: i32, %arg1: memref<128x32xf32, #tpu.memory_space<vmem>>, %arg2: memref<32x128xf32, #tpu.memory_space<vmem>>, %arg3: memref<1x128xf32, #tpu.memory_space<vmem>>, %arg4: memref<1x128xf32, #tpu.memory_space<vmem>>, %arg5: memref<1x1xf32, #tpu.memory_space<smem>>, %arg6: memref<128x128xf32, #tpu.memory_space<vmem>>, %arg7: memref<128x1xf32, #tpu.memory_space<vmem>>) attributes {dimension_semantics = [#tpu.dimension_semantics<parallel>], iteration_bounds = array<i64: 2>, scalar_prefetch = 0 : i64, scratch_operands = 0 : i64, tpu.core_type = #tpu.core_type<tc>, window_params = [{transform_indices = @transform_0, window_bounds = array<i64: 128, 32>}, {pipeline_mode = #tpu.pipeline_mode<synchronous>, transform_indices = @transform_1, window_bounds = array<i64: 32, 128>}, {pipeline_mode = #tpu.pipeline_mode<synchronous>, transform_indices = @transform_2, window_bounds = array<i64: 1, 128>}, {pipeline_mode = #tpu.pipeline_mode<synchronous>, transform_indices = @transform_3, window_bounds = array<i64: 1, 128>}, {transform_indices = @transform_4, window_bounds = array<i64: 1, 1>}, {transform_indices = @transform_5, window_bounds = array<i64: 128, 128>}, {transform_indices = @transform_6, window_bounds = array<i64: 128, 1>}]} {
    %c0 = arith.constant 0 : index
    %c0_0 = arith.constant 0 : index
    %0 = vector.load %arg1[%c0, %c0_0] : memref<128x32xf32, #tpu.memory_space<vmem>>, vector<128x32xf32>
    %c0_1 = arith.constant 0 : index
    %c0_2 = arith.constant 0 : index
    %1 = vector.load %arg2[%c0_1, %c0_2] : memref<32x128xf32, #tpu.memory_space<vmem>>, vector<32x128xf32>
    %cst = arith.constant dense<0.000000e+00> : vector<128x128xf32>
    %2 = tpu.matmul %0, %1, %cst {dimension_numbers = #tpu.dot_dimension_numbers<[1], [0], [0], [1], [0, 0, 1, 1], [], []>} : vector<128x32xf32>, vector<32x128xf32>, vector<128x128xf32> -> vector<128x128xf32>
    %c0_3 = arith.constant 0 : index
    %c0_4 = arith.constant 0 : index
    %3 = vector.load %arg3[%c0_3, %c0_4] : memref<1x128xf32, #tpu.memory_space<vmem>>, vector<1x128xf32>
    %4 = vector.broadcast %3 : vector<1x128xf32> to vector<128x128xf32>
    %5 = arith.addf %2, %4 : vector<128x128xf32>
    %cst_5 = arith.constant 0.000000e+00 : f32
    %6 = vector.broadcast %cst_5 : f32 to vector<128x128xf32>
    %7 = arith.maximumf %5, %6 : vector<128x128xf32>
    %c0_6 = arith.constant 0 : index
    %c0_7 = arith.constant 0 : index
    %8 = vector.load %arg6[%c0_6, %c0_7] : memref<128x128xf32, #tpu.memory_space<vmem>>, vector<128x128xf32>
    tpu.vector_store %arg6[%c0_6, %c0_7], %7 {strides = array<i32>} : memref<128x128xf32, #tpu.memory_space<vmem>>, vector<128x128xf32>,
    %c0_8 = arith.constant 0 : index
    %c0_9 = arith.constant 0 : index
    %9 = vector.load %arg4[%c0_8, %c0_9] : memref<1x128xf32, #tpu.memory_space<vmem>>, vector<1x128xf32>
    %10 = arith.mulf %9, %9 : vector<1x128xf32>
    %11 = vector.shape_cast %10 : vector<1x128xf32> to vector<1x1x128xf32>
    %cst_10 = arith.constant dense<0.000000e+00> : vector<1xf32>
    %12 = vector.multi_reduction <add>, %11, %cst_10 [1, 2] : vector<1x1x128xf32> to vector<1xf32>
    %13 = vector.shape_cast %12 : vector<1xf32> to vector<1x1x1xf32>
    %14 = vector.extract %13[0, 0, 0] : f32 from vector<1x1x1xf32>
    %cst_11 = arith.constant 9.99999996E-13 : f32
    %15 = arith.addf %14, %cst_11 : f32
    %16 = math.rsqrt %15 : f32
    %17 = vector.broadcast %9 : vector<1x128xf32> to vector<128x128xf32>
    %18 = arith.mulf %7, %17 : vector<128x128xf32>
    %cst_12 = arith.constant dense<0.000000e+00> : vector<128xf32>
    %19 = vector.multi_reduction <add>, %18, %cst_12 [1] : vector<128x128xf32> to vector<128xf32>
    %20 = vector.shape_cast %19 : vector<128xf32> to vector<128x1xf32>
    %21 = vector.broadcast %16 : f32 to vector<128x1xf32>
    %22 = arith.mulf %20, %21 : vector<128x1xf32>
    %c0_13 = arith.constant 0 : index
    %c0_14 = arith.constant 0 : index
    %23 = memref.load %arg5[%c0_13, %c0_14] : memref<1x1xf32, #tpu.memory_space<smem>>
    %24 = vector.broadcast %23 : f32 to vector<128x1xf32>
    %25 = arith.addf %22, %24 : vector<128x1xf32>
    %c0_15 = arith.constant 0 : index
    %c0_16 = arith.constant 0 : index
    %26 = vector.load %arg7[%c0_15, %c0_16] : memref<128x1xf32, #tpu.memory_space<vmem>>, vector<128x1xf32>
    tpu.vector_store %arg7[%c0_15, %c0_16], %25 {strides = array<i32>} : memref<128x1xf32, #tpu.memory_space<vmem>>, vector<128x1xf32>,
    return
  }
  func.func @transform_0(%arg0: i32) -> (i32, i32) {
    %c0_i32 = arith.constant 0 : i32
    %c0_i32_0 = arith.constant 0 : i32
    return %arg0, %c0_i32 : i32, i32
  }
  func.func @transform_1(%arg0: i32) -> (i32, i32) {
    %c0_i32 = arith.constant 0 : i32
    %c0_i32_0 = arith.constant 0 : i32
    %c0_i32_1 = arith.constant 0 : i32
    return %c0_i32, %c0_i32_0 : i32, i32
  }
  func.func @transform_2(%arg0: i32) -> (i32, i32) {
    %c0_i32 = arith.constant 0 : i32
    %c0_i32_0 = arith.constant 0 : i32
    %c0_i32_1 = arith.constant 0 : i32
    return %c0_i32, %c0_i32_0 : i32, i32
  }
  func.func @transform_3(%arg0: i32) -> (i32, i32) {
    %c0_i32 = arith.constant 0 : i32
    %c0_i32_0 = arith.constant 0 : i32
    %c0_i32_1 = arith.constant 0 : i32
    return %c0_i32, %c0_i32_0 : i32, i32
  }
  func.func @transform_4(%arg0: i32) -> (i32, i32) {
    %c0_i32 = arith.constant 0 : i32
    %c0_i32_0 = arith.constant 0 : i32
    %c0_i32_1 = arith.constant 0 : i32
    return %c0_i32, %c0_i32_0 : i32, i32
  }
  func.func @transform_5(%arg0: i32) -> (i32, i32) {
    %c0_i32 = arith.constant 0 : i32
    %c0_i32_0 = arith.constant 0 : i32
    return %arg0, %c0_i32 : i32, i32
  }
  func.func @transform_6(%arg0: i32) -> (i32, i32) {
    %c0_i32 = arith.constant 0 : i32
    %c0_i32_0 = arith.constant 0 : i32
    return %arg0, %c0_i32 : i32, i32
  }
}

</mosaic_0001>

<bundles_post_ra>
// kernel: _lambda_.1
= control target key start
LH: loop header
LB: loop body
LE: loop exit
PB: predicated region body
PF: predicated region fallthrough
CT: control target
= control target key end

     0   :  { %s890_s23 = smov 0   ;;  %s1096_s0 = inlined_call_operand.vmem [shape: f32[256,32], index: 0, kind: input, shape index: {}]   ;;  %s1097_s1 = inlined_call_operand.vmem [shape: f32[32,128], index: 1, kind: input, shape index: {}]   ;;  %s1098_s2 = inlined_call_operand.vmem [shape: f32[1,128], index: 2, kind: input, shape index: {}]   ;;  %s1099_s3 = inlined_call_operand.vmem [shape: f32[1,128], index: 3, kind: input, shape index: {}]   ;;  %s1100_s4 = inlined_call_operand.<no memory space> [shape: f32[1,1], index: 4, kind: input, shape index: {}]   ;;  %s1101_s5 = inlined_call_operand.vmem [shape: f32[256,128], index: 5, kind: output, shape index: {0}]   ;;  %s1102_s6 = inlined_call_operand.vmem [shape: f32[256,1], index: 6, kind: output, shape index: {1}]  }
   0x1   :  { %12 = sst [smem:[#allocation2]] %s1100_s4 }
   0x2 LB: > { %s736_s24 = sadd.s32 4294967295, %s850_s23   ;;  %p740_p0 = scmp.ge.s32.totalorder %s850_s23, 1  ;;  %s850_s23 = sphi %s890_s23, %s18_s23  }
   0x3   : > { %p217_p1 = scmp.lt.s32.totalorder %s850_s23, 3 }
   0x5   : > { %p218_p2 = pnand %p740_p0, %p217_p1 }
   0x6   : > { %v286_v0 = vld [vmem:[%s1097_s1] sm:$0xff] (!%p218_p2)  ;;  %v287_v1 = vld [vmem:[%s1097_s1 + $0x8] sm:$0xff] (!%p218_p2)  ;;  %v288_v2 = vld [vmem:[%s1097_s1 + $0x10] sm:$0xff] (!%p218_p2)  ;;  %s741_s30 = sshll.u32 (!%p218_p2), %s736_s24, 4  ;;  %vm525_vm0 = vcmask (!%p218_p2), 1040384   ;;  %vm297_vm1 = vcmask (!%p218_p2), 261120   ;;  %v541_v32 = vlaneseq (!%p218_p2) }
   0x7   : > { %221 = sbr.rel (%p218_p2) target bundleno = 413 (0x19d), region = 40  ;;  %v818_v3 = vpack.c.bf16 (!%p218_p2), %v287_v1, %v286_v0  ;;  %v289_v4 = vld [vmem:[%s1097_s1 + $0x18] sm:$0xff] (!%p218_p2)  ;;  %p253_p3 = scmp.lt.s32.totalorder (!%p218_p2), %s741_s30, 31  ;;  %v913_v5 = vld [vmem:[%s1099_s3] sm:$0x1] (!%p218_p2)  ;;  %vm629_vm2 = vcmask (!%p218_p2), 7168  }
   0x8   : > { %v822_v6 = vpack.c.bf16 (!%p218_p2), %v289_v4, %v288_v2  ;;  %v524_v7 = vmul.f32 (!%p218_p2), %v913_v5, %v913_v5  ;;  %v542_v34 = vshrl.u32 (!%p218_p2), %v541_v32, 7  ;;  %v960_v36 = vld [vmem:[%s1098_s2] ss:$0 sm:$0xff] (!%p218_p2)  ;;  %s611_s22 = sld [smem:[#allocation2]] (!%p218_p2) }
   0x9   : > { %819 = vmatprep.subr.bf16.mxu0 (!%p218_p2), %v818_v3  ;;  %826 = vmatprep.subr.bf16.mxu1 (!%p218_p2), %v818_v3 }
   0xa   : > { %821 = vmatpush3.bf16.msra.mxu0 (!%p218_p2), %v818_v3  ;;  %828 = vmatpush3.bf16.msra.mxu1 (!%p218_p2), %v818_v3  ;;  %v526_v8 = vsel (!%p218_p2), %vm525_vm0, %v524_v7, 0.0  ;;  %v543_v35 = vsub.s32 (!%p218_p2), 0, %v542_v34 }
   0xb   : > { %823 = vmatprep.subr.bf16.mxu0 (!%p218_p2), %v822_v6  ;;  %827 = vmatprep.subr.bf16.mxu1 (!%p218_p2), %v822_v6 }
   0xc   : > { %527 = vadd.xlane.f32.xlu0 (!%p218_p2), %v526_v8  ;;  %v963_v40 = vrot.slane (!%p218_p2), %v913_v5, %v543_v35 }
   0xe   : > { %s1104_s30 = smov (!%p253_p3, %s741_s30), 31  ;;  %825 = vmatpush3.bf16.msra.mxu0 %v822_v6  ;;  %829 = vmatpush3.bf16.msra.mxu1 %v822_v6 }
   0xf   : > { %s917_s11 = sshll.u32 %s1104_s30, 3 }
  0x10   : > { %s923_s14 = scalar_lea.vmem %s1096_s0, %s917_s11  ;;  %s971_s21 = scalar_lea.vmem %s1101_s5, %s917_s11 }
  0x11   : > { %v270_v9 = vld [vmem:[%s923_s14] sm:$0xff]  ;;  %v271_v11 = vld [vmem:[%s923_s14 + $0x8] sm:$0xff]  ;;  %v272_v13 = vld [vmem:[%s923_s14 + $0x10] sm:$0xff]  ;;  %s1029_s4 = scalar_lea.vmem %s1102_s6, %s917_s11 }
  0x12   : > { %v278_v10 = vld [vmem:[%s923_s14 + $0x40] sm:$0xff]  ;;  %v279_v12 = vld [vmem:[%s923_s14 + $0x48] sm:$0xff]  ;;  %794 = vmatprep.mubr.msk.f32.mxu0 %vm297_vm1, %v270_v9  ;;  %v280_v14 = vld [vmem:[%s923_s14 + $0x50] sm:$0xff] }
  0x13   : > { %806 = vmatprep.mubr.msk.f32.mxu1 %vm297_vm1, %v278_v10  ;;  %795 = vmatmul.mubr.msk.f32.vlgmr.msra.gmra.mrb[0].mxu0 %vm297_vm1, %v271_v11  ;;  %v273_v15 = vld [vmem:[%s923_s14 + $0x18] sm:$0xff]  ;;  %v274_v17 = vld [vmem:[%s923_s14 + $0x20] sm:$0xff]  ;;  %v275_v19 = vld [vmem:[%s923_s14 + $0x28] sm:$0xff] }
  0x14   : > { %807 = vmatmul.mubr.msk.f32.vlgmr.msra.gmra.mrb[0].mxu1 %vm297_vm1, %v279_v12  ;;  %797 = vmatprep.mubr.msk.f32.mxu0 %vm297_vm1, %v272_v13  ;;  %v281_v16 = vld [vmem:[%s923_s14 + $0x58] sm:$0xff]  ;;  %v282_v18 = vld [vmem:[%s923_s14 + $0x60] sm:$0xff]  ;;  %v283_v20 = vld [vmem:[%s923_s14 + $0x68] sm:$0xff] }
  0x15   : > { %809 = vmatprep.mubr.msk.f32.mxu1 %vm297_vm1, %v280_v14  ;;  %v276_v21 = vld [vmem:[%s923_s14 + $0x30] sm:$0xff]  ;;  %v277_v23 = vld [vmem:[%s923_s14 + $0x38] sm:$0xff] }
  0x16   : > { %v284_v22 = vld [vmem:[%s923_s14 + $0x70] sm:$0xff]  ;;  %v285_v24 = vld [vmem:[%s923_s14 + $0x78] sm:$0xff] }
  0x17   : > { %798 = vmatmul.mubr.msk.f32.gmra.mrb[2].mxu0 %vm297_vm1, %v273_v15 }
  0x18   : > { %810 = vmatmul.mubr.msk.f32.gmra.mrb[2].mxu1 %vm297_vm1, %v281_v16  ;;  %800 = vmatprep.mubr.msk.f32.mxu0 %vm297_vm1, %v274_v17 }
  0x19   : > { %812 = vmatprep.mubr.msk.f32.mxu1 %vm297_vm1, %v282_v18 }
  0x1b   : > { %801 = vmatmul.mubr.msk.f32.gmra.mrb[4].mxu0 %vm297_vm1, %v275_v19 }
  0x1c   : > { %813 = vmatmul.mubr.msk.f32.gmra.mrb[4].mxu1 %vm297_vm1, %v283_v20  ;;  %803 = vmatprep.mubr.msk.f32.mxu0 %vm297_vm1, %v276_v21 }
  0x1d   : > { %815 = vmatprep.mubr.msk.f32.mxu1 %vm297_vm1, %v284_v22 }
  0x1f   : > { %804 = vmatmul.mubr.msk.f32.gmra.mrb[6].mxu0 %vm297_vm1, %v277_v23 }
  0x20   : > { %816 = vmatmul.mubr.msk.f32.gmra.mrb[6].mxu1 %vm297_vm1, %v285_v24 }
  0x99   : > { %v528_v25 = vpop.xlane.xlu0 %527 }
  0x9a   : > { %v529_v26 = vrot.slane %v528_v25, 4 }
  0x9c   : > { %v530_v27 = vadd.f32 %v529_v26, %v528_v25 }
  0x9e   : > { %v531_v28 = vrot.slane %v530_v27, 2 }
  0xa0   : > { %v532_v29 = vadd.f32 %v531_v28, %v530_v27 }
  0xa2   : > { %v533_v30 = vrot.slane %v532_v29, 1 }
  0xa4   : > { %v534_v31 = vadd.f32 %v533_v30, %v532_v29 }
  0xa6   : > { %830 = vpush %v534_v31 }
  0xd7   : > { %s831_s15 = spop %830 }
  0xd8   : > { %s536_s16 = sadd.f32 1e-12, %s831_s15 }
  0xda   : > { %v537_v33 = vstv %s536_s16 }
  0xdb   : > { %842 = vrsqrt.f32 %v537_v33 }
  0xe5   : > { %v843_v39 = vpop.eup %842 }
  0xe6   : > { %v796_v37 = vpop.f32.mrb[0].mxu0  ;;  %832 = vpush %v843_v39 }
  0xe7   : > { %v808_v38 = vpop.f32.mrb[0].mxu1  ;;  %v418_v41 = vadd.f32 %v796_v37, %v960_v36  ;;  %v412_v43 = vpop.f32.mrb[1].mxu0 }
  0xe8   : > { %v458_v42 = vadd.f32 %v808_v38, %v960_v36  ;;  %v452_v44 = vpop.f32.mrb[1].mxu1  ;;  %v413_v45 = vadd.f32 %v960_v36, %v412_v43 }
  0xe9   : > { %v453_v46 = vadd.f32 %v960_v36, %v452_v44  ;;  %v492_v47 = vmax.f32 %v418_v41, 0.0  ;;  %v1021_v41 = vstv %s611_s22 }
  0xea   : > { %v500_v48 = vmax.f32 %v458_v42, 0.0  ;;  %v491_v49 = vmax.f32 %v413_v45, 0.0  ;;  %v799_v51 = vpop.f32.mrb[2].mxu0 }
  0xeb   : > { %v499_v50 = vmax.f32 %v453_v46, 0.0  ;;  %v811_v52 = vpop.f32.mrb[2].mxu1  ;;  %508 = vst [vmem:[%s971_s21 + $0x8] sm:$0xff] %v492_v47  ;;  %v428_v53 = vadd.f32 %v799_v51, %v960_v36  ;;  %v547_v55 = vmul.f32 %v963_v40, %v492_v47  ;;  %v422_v56 = vpop.f32.mrb[3].mxu0 }
  0xec   : > { %516 = vst [vmem:[%s971_s21 + $0x48] sm:$0xff] %v500_v48  ;;  %v555_v54 = vmul.f32 %v963_v40, %v500_v48  ;;  %v468_v57 = vadd.f32 %v811_v52, %v960_v36  ;;  %v462_v58 = vpop.f32.mrb[3].mxu1  ;;  %507 = vst [vmem:[%s971_s21] sm:$0xff] %v491_v49  ;;  %v423_v59 = vadd.f32 %v960_v36, %v422_v56 }
  0xed   : > { %515 = vst [vmem:[%s971_s21 + $0x40] sm:$0xff] %v499_v50  ;;  %v463_v60 = vadd.f32 %v960_v36, %v462_v58  ;;  %v554_v61 = vmul.f32 %v963_v40, %v499_v50  ;;  %v546_v62 = vmul.f32 %v963_v40, %v491_v49  ;;  %v494_v63 = vmax.f32 %v428_v53, 0.0  ;;  %564 = vadd.xlane.f32.xlu1 %v547_v55 }
  0xee   : > { %580 = vadd.xlane.f32.xlu0 %v555_v54  ;;  %v502_v0 = vmax.f32 %v468_v57, 0.0  ;;  %v493_v1 = vmax.f32 %v423_v59, 0.0  ;;  %v802_v3 = vpop.f32.mrb[4].mxu0 }
  0xef   : > { %v501_v2 = vmax.f32 %v463_v60, 0.0  ;;  %v814_v4 = vpop.f32.mrb[4].mxu1  ;;  %510 = vst [vmem:[%s971_s21 + $0x18] sm:$0xff] %v494_v63  ;;  %v438_v5 = vadd.f32 %v802_v3, %v960_v36  ;;  %v432_v6 = vpop.f32.mrb[5].mxu0  ;;  %v549_v7 = vmul.f32 %v963_v40, %v494_v63 }
  0xf0   : > { %518 = vst [vmem:[%s971_s21 + $0x58] sm:$0xff] %v502_v0  ;;  %v478_v8 = vadd.f32 %v814_v4, %v960_v36  ;;  %v472_v9 = vpop.f32.mrb[5].mxu1  ;;  %v557_v10 = vmul.f32 %v963_v40, %v502_v0  ;;  %509 = vst [vmem:[%s971_s21 + $0x10] sm:$0xff] %v493_v1  ;;  %v433_v11 = vadd.f32 %v960_v36, %v432_v6 }
  0xf1   : > { %517 = vst [vmem:[%s971_s21 + $0x50] sm:$0xff] %v501_v2  ;;  %v548_v12 = vmul.f32 %v963_v40, %v493_v1  ;;  %v473_v13 = vadd.f32 %v960_v36, %v472_v9  ;;  %v556_v14 = vmul.f32 %v963_v40, %v501_v2  ;;  %578 = vadd.xlane.f32.xlu1 %v554_v61  ;;  %v496_v15 = vmax.f32 %v438_v5, 0.0 }
  0xf2   : > { %562 = vadd.xlane.f32.xlu0 %v546_v62  ;;  %v504_v16 = vmax.f32 %v478_v8, 0.0  ;;  %v495_v17 = vmax.f32 %v433_v11, 0.0  ;;  %v805_v19 = vpop.f32.mrb[6].mxu0 }
  0xf3   : > { %v503_v18 = vmax.f32 %v473_v13, 0.0  ;;  %v817_v20 = vpop.f32.mrb[6].mxu1  ;;  %512 = vst [vmem:[%s971_s21 + $0x28] sm:$0xff] %v496_v15  ;;  %v448_v21 = vadd.f32 %v805_v19, %v960_v36  ;;  %v442_v22 = vpop.f32.mrb[7].mxu0  ;;  %v551_v23 = vmul.f32 %v963_v40, %v496_v15 }
  0xf4   : > { %520 = vst [vmem:[%s971_s21 + $0x68] sm:$0xff] %v504_v16  ;;  %v488_v24 = vadd.f32 %v817_v20, %v960_v36  ;;  %v482_v25 = vpop.f32.mrb[7].mxu1  ;;  %v559_v26 = vmul.f32 %v963_v40, %v504_v16  ;;  %511 = vst [vmem:[%s971_s21 + $0x20] sm:$0xff] %v495_v17  ;;  %v443_v27 = vadd.f32 %v960_v36, %v442_v22 }
  0xf5   : > { %519 = vst [vmem:[%s971_s21 + $0x60] sm:$0xff] %v503_v18  ;;  %v550_v28 = vmul.f32 %v963_v40, %v495_v17  ;;  %v483_v29 = vadd.f32 %v960_v36, %v482_v25  ;;  %v558_v30 = vmul.f32 %v963_v40, %v503_v18  ;;  %566 = vadd.xlane.f32.xlu1 %v548_v12  ;;  %v498_v31 = vmax.f32 %v448_v21, 0.0 }
  0xf6   : > { %568 = vadd.xlane.f32.xlu0 %v549_v7  ;;  %v506_v32 = vmax.f32 %v488_v24, 0.0  ;;  %v497_v33 = vmax.f32 %v443_v27, 0.0 }
  0xf7   : > { %v505_v34 = vmax.f32 %v483_v29, 0.0  ;;  %514 = vst [vmem:[%s971_s21 + $0x38] sm:$0xff] %v498_v31  ;;  %v553_v35 = vmul.f32 %v963_v40, %v498_v31 }
  0xf8   : > { %522 = vst [vmem:[%s971_s21 + $0x78] sm:$0xff] %v506_v32  ;;  %v561_v37 = vmul.f32 %v963_v40, %v506_v32  ;;  %513 = vst [vmem:[%s971_s21 + $0x30] sm:$0xff] %v497_v33  ;;  %v552_v38 = vmul.f32 %v963_v40, %v497_v33 }
  0xf9   : > { %521 = vst [vmem:[%s971_s21 + $0x70] sm:$0xff] %v505_v34  ;;  %v560_v36 = vmul.f32 %v963_v40, %v505_v34  ;;  %582 = vadd.xlane.f32.xlu1 %v556_v14 }
  0xfa   : > { %584 = vadd.xlane.f32.xlu0 %v557_v10 }
  0xfd   : > { %570 = vadd.xlane.f32.xlu1 %v550_v28 }
  0xfe   : > { %572 = vadd.xlane.f32.xlu0 %v551_v23 }
 0x101   : > { %586 = vadd.xlane.f32.xlu1 %v558_v30 }
 0x102   : > { %588 = vadd.xlane.f32.xlu0 %v559_v26 }
 0x105   : > { %574 = vadd.xlane.f32.xlu1 %v552_v38 }
 0x106   : > { %576 = vadd.xlane.f32.xlu0 %v553_v35 }
 0x109   : > { %590 = vadd.xlane.f32.xlu1 %v560_v36 }
 0x10a   : > { %592 = vadd.xlane.f32.xlu0 %v561_v37 }
 0x117   : > { %s833_s24 = spop %832 }
 0x118   : > { %v1019_v39 = vstv %s833_s24 }
 0x17a   : > { %v565_v43 = vpop.xlane.xlu1 %564 }
 0x17b   : > { %v581_v42 = vpop.xlane.xlu0 %580  ;;  %v596_v44 = vmul.f32 %v1019_v39, %v565_v43 }
 0x17c   : > { %v604_v40 = vmul.f32 %v1019_v39, %v581_v42 }
 0x17d   : > { %v614_v46 = vadd.f32 %v1021_v41, %v596_v44 }
 0x17e   : > { %v622_v45 = vadd.f32 %v1021_v41, %v604_v40  ;;  %v579_v47 = vpop.xlane.xlu1 %578 }
 0x17f   : > { %v563_v48 = vpop.xlane.xlu0 %562  ;;  %631 = vst.msk [vmem:[%s1029_s4 + $0x8] sm:$0xff] %vm629_vm2, %v614_v46  ;;  %v603_v49 = vmul.f32 %v1019_v39, %v579_v47 }
 0x180   : > { %639 = vst.msk [vmem:[%s1029_s4 + $0x48] sm:$0xff] %vm629_vm2, %v622_v45  ;;  %v595_v50 = vmul.f32 %v1019_v39, %v563_v48 }
 0x181   : > { %v621_v51 = vadd.f32 %v1021_v41, %v603_v49 }
 0x182   : > { %v613_v52 = vadd.f32 %v1021_v41, %v595_v50  ;;  %v567_v53 = vpop.xlane.xlu1 %566 }
 0x183   : > { %v569_v54 = vpop.xlane.xlu0 %568  ;;  %638 = vst.msk [vmem:[%s1029_s4 + $0x40] sm:$0xff] %vm629_vm2, %v621_v51  ;;  %v597_v55 = vmul.f32 %v1019_v39, %v567_v53 }
 0x184   : > { %630 = vst.msk [vmem:[%s1029_s4] sm:$0xff] %vm629_vm2, %v613_v52  ;;  %v598_v56 = vmul.f32 %v1019_v39, %v569_v54 }
 0x185   : > { %v615_v57 = vadd.f32 %v1021_v41, %v597_v55 }
 0x186   : > { %v616_v58 = vadd.f32 %v1021_v41, %v598_v56  ;;  %v583_v59 = vpop.xlane.xlu1 %582 }
 0x187   : > { %v585_v60 = vpop.xlane.xlu0 %584  ;;  %632 = vst.msk [vmem:[%s1029_s4 + $0x10] sm:$0xff] %vm629_vm2, %v615_v57  ;;  %v605_v61 = vmul.f32 %v1019_v39, %v583_v59 }
 0x188   : > { %633 = vst.msk [vmem:[%s1029_s4 + $0x18] sm:$0xff] %vm629_vm2, %v616_v58  ;;  %v606_v62 = vmul.f32 %v1019_v39, %v585_v60 }
 0x189   : > { %v623_v63 = vadd.f32 %v1021_v41, %v605_v61 }
 0x18a   : > { %v624_v0 = vadd.f32 %v1021_v41, %v606_v62  ;;  %v571_v1 = vpop.xlane.xlu1 %570 }
 0x18b   : > { %v573_v2 = vpop.xlane.xlu0 %572  ;;  %640 = vst.msk [vmem:[%s1029_s4 + $0x50] sm:$0xff] %vm629_vm2, %v623_v63  ;;  %v599_v3 = vmul.f32 %v1019_v39, %v571_v1 }
 0x18c   : > { %641 = vst.msk [vmem:[%s1029_s4 + $0x58] sm:$0xff] %vm629_vm2, %v624_v0  ;;  %v600_v4 = vmul.f32 %v1019_v39, %v573_v2 }
 0x18d   : > { %v617_v5 = vadd.f32 %v1021_v41, %v599_v3 }
 0x18e   : > { %v618_v6 = vadd.f32 %v1021_v41, %v600_v4  ;;  %v587_v7 = vpop.xlane.xlu1 %586 }
 0x18f   : > { %v589_v8 = vpop.xlane.xlu0 %588  ;;  %634 = vst.msk [vmem:[%s1029_s4 + $0x20] sm:$0xff] %vm629_vm2, %v617_v5  ;;  %v607_v9 = vmul.f32 %v1019_v39, %v587_v7 }
 0x190   : > { %635 = vst.msk [vmem:[%s1029_s4 + $0x28] sm:$0xff] %vm629_vm2, %v618_v6  ;;  %v608_v10 = vmul.f32 %v1019_v39, %v589_v8 }
 0x191   : > { %v625_v11 = vadd.f32 %v1021_v41, %v607_v9 }
 0x192   : > { %v626_v12 = vadd.f32 %v1021_v41, %v608_v10  ;;  %v575_v13 = vpop.xlane.xlu1 %574 }
 0x193   : > { %v577_v14 = vpop.xlane.xlu0 %576  ;;  %642 = vst.msk [vmem:[%s1029_s4 + $0x60] sm:$0xff] %vm629_vm2, %v625_v11  ;;  %v601_v15 = vmul.f32 %v1019_v39, %v575_v13 }
 0x194   : > { %643 = vst.msk [vmem:[%s1029_s4 + $0x68] sm:$0xff] %vm629_vm2, %v626_v12  ;;  %v602_v16 = vmul.f32 %v1019_v39, %v577_v14 }
 0x195   : > { %v619_v17 = vadd.f32 %v1021_v41, %v601_v15 }
 0x196   : > { %v620_v18 = vadd.f32 %v1021_v41, %v602_v16  ;;  %v591_v19 = vpop.xlane.xlu1 %590 }
 0x197   : > { %v593_v20 = vpop.xlane.xlu0 %592  ;;  %636 = vst.msk [vmem:[%s1029_s4 + $0x30] sm:$0xff] %vm629_vm2, %v619_v17  ;;  %v609_v21 = vmul.f32 %v1019_v39, %v591_v19 }
 0x198   : > { %637 = vst.msk [vmem:[%s1029_s4 + $0x38] sm:$0xff] %vm629_vm2, %v620_v18  ;;  %v610_v22 = vmul.f32 %v1019_v39, %v593_v20 }
 0x199   : > { %v627_v23 = vadd.f32 %v1021_v41, %v609_v21 }
 0x19a   : > { %v628_v24 = vadd.f32 %v1021_v41, %v610_v22 }
 0x19b   : > { %644 = vst.msk [vmem:[%s1029_s4 + $0x70] sm:$0xff] %vm629_vm2, %v627_v23 }
 0x19c   : > { %645 = vst.msk [vmem:[%s1029_s4 + $0x78] sm:$0xff] %vm629_vm2, %v628_v24 }
 0x19d PF: > { %s18_s23 = sadd.s32 1, %s850_s23  }
 0x19e   : > { %p15_p4 = scmp.ge.s32.totalorder %s18_s23, 4  }
 0x1a0   :  { %17 = sbr.rel (!%p15_p4) target bundleno = 2 (0x2), region = 82 }

</bundles_post_ra>
